<compile_context>
chip_gen: v7x
topology: tpu7x:2x2x1
jax: 0.10.0
libtpu: 0.0.40
codegen_flags: <defaults>
</compile_context>

<pallas_src>
import jax
import jax.numpy as jnp
from jax.experimental import pallas as pl
from jax.experimental.pallas import tpu as pltpu


def _round_up(a: int, b: int) -> int:
    return ((a + b - 1) // b) * b


def _make_kernel(n_img, c_in, kh, kw, w_img, m_out):
    """Kernel closure over the static conv geometry.

    Ref shapes:
      x_ref:     (N, C_in, M_in)   f32   flattened (row-major) images, zero-padded lanes
      w_ref:     (C_out, K)        bf16  tap-major repacked conv weight, K = KH*KW*C_in
      alpha_ref: (C_out, 1)        f32   PReLU slopes
      o_ref:     (N, C_out, M_out) f32   channel-major output, M_out % 128 == 0
      patch_ref: (K, M_out)        f32   VMEM scratch im2col slab
    """

    def kernel(x_ref, w_ref, alpha_ref, o_ref, patch_ref):
        w_mat = w_ref[...]          # (C_out, K) bf16, resident across the whole call
        alpha = alpha_ref[...]      # (C_out, 1) f32

        for img in range(n_img):    # N is tiny & static -> unrolled, single grid step
            x_img = x_ref[img]      # (C_in, M_in) f32, one VMEM load per image

            # In-kernel im2col: tap (dh, dw) of a VALID 3x3 conv on the
            # row-major-flattened image is simply the image shifted left by
            # s = dh*W + dw lanes.  Static lane-offset slices, written into a
            # tap-major (K, M_out) scratch slab.
            for dh in range(kh):
                for dw in range(kw):
                    tap = dh * kw + dw
                    s = dh * w_img + dw
                    patch_ref[tap * c_in:(tap + 1) * c_in, :] = x_img[:, s:s + m_out]

            # One lane-dense MXU matmul per image: (C_out, K) x (K, M_out),
            # bf16 operands, f32 accumulation.
            patches = patch_ref[...].astype(jnp.bfloat16)
            acc = jnp.dot(w_mat, patches, preferred_element_type=jnp.float32)

            # Per-channel PReLU in f32 (alpha broadcasts over the lane axis).
            y = jnp.where(acc >= 0, acc, acc * alpha)

            # Full-block, unmasked store (M_out is a multiple of 128).
            o_ref[img] = y.astype(o_ref.dtype)

    return kernel


@jax.jit
def conv_block_noac(x_nchw, weight_oihw, alpha):
    """Forward of Conv_block_noac (kernel=3, stride=1, padding=0, groups=1, no bias).

    x_nchw:      (N, C_in, H, W)   float32
    weight_oihw: (C_out, C_in, KH, KW)
    alpha:       (C_out,)  PReLU slope
    returns:     (N, C_out, H_out, W_out) float32
    """
    n, c_in, h, w = x_nchw.shape
    c_out, _, kh, kw = weight_oihw.shape
    h_out, w_out = h - kh + 1, w - kw + 1
    k = c_in * kh * kw

    # Lane-dense geometry:
    #   M_out  covers flattened output positions p = i*W + j, rounded up to 128.
    #   M_in   must additionally cover the largest tap shift s_max = (kh-1)*W + (kw-1).
    # Valid outputs only read real pixels (p + s <= H*W - 1), so the zero pad
    # never contaminates the cropped result.
    m_out = _round_up(h_out * w, 128)
    s_max = (kh - 1) * w + (kw - 1)
    m_in = _round_up(m_out + s_max, 128)

    x_flat = x_nchw.reshape(n, c_in, h * w)                       # free (contiguous) reshape
    x_pad = jnp.pad(x_flat, ((0, 0), (0, 0), (0, m_in - h * w)))  # tiny zero pad

    # Tap-major weight repack matching the patch-slab row ordering
    # row = (dh*KW + dw)*C_in + ci ;  streamed as bf16 (f32 accumulation in-kernel).
    w2d = jnp.transpose(weight_oihw, (0, 2, 3, 1)).reshape(c_out, k).astype(jnp.bfloat16)
    alpha2d = alpha.reshape(c_out, 1).astype(jnp.float32)

    cost = pl.CostEstimate(
        flops=2 * n * c_out * k * h_out * w_out,
        transcendentals=0,
        bytes_accessed=(x_pad.size * 4 + w2d.size * 2 + alpha2d.size * 4
                        + n * c_out * m_out * 4),
    )

    out = pl.pallas_call(
        _make_kernel(n, c_in, kh, kw, w, m_out),
        out_shape=jax.ShapeDtypeStruct((n, c_out, m_out), x_nchw.dtype),
        grid_spec=pltpu.PrefetchScalarGridSpec(
            num_scalar_prefetch=0,
            grid=(1,),                                               # single step: no per-step overhead
            in_specs=[
                pl.BlockSpec((n, c_in, m_in), lambda i: (0, 0, 0)),  # raw images, resident
                pl.BlockSpec((c_out, k), lambda i: (0, 0)),          # weight, resident
                pl.BlockSpec((c_out, 1), lambda i: (0, 0)),          # PReLU slopes, resident
            ],
            out_specs=pl.BlockSpec((n, c_out, m_out), lambda i: (0, 0, 0)),
            scratch_shapes=[pltpu.VMEM((k, m_out), jnp.float32)],    # im2col slab
        ),
        compiler_params=pltpu.CompilerParams(dimension_semantics=("arbitrary",)),
        cost_estimate=cost,
    )(x_pad, w2d, alpha2d)

    # p = i*W + j  ->  reshape rows of length W, crop the valid conv window.
    y = out[:, :, : h_out * w].reshape(n, c_out, h_out, w)[:, :, :, :w_out]
    return y


def _reference(x_nchw, weight_oihw, alpha):
    """Pure-JAX reference (lax conv + PReLU), PyTorch semantics."""
    y = jax.lax.conv_general_dilated(
        x_nchw, weight_oihw,
        window_strides=(1, 1), padding="VALID",
        dimension_numbers=("NCHW", "OIHW", "NCHW"),
        preferred_element_type=jnp.float32,
    )
    a = alpha.reshape(1, -1, 1, 1)
    return jnp.where(y >= 0, y, a * y)


if __name__ == "__main__":
    key = jax.random.PRNGKey(0)
    k_x, k_w = jax.random.split(key)

    # Shapes consistent with the module: in_c=4, out_c=8, kernel=3, stride=1, pad=0
    N, C_IN, H, W = 2, 4, 16, 16
    C_OUT, K = 8, 3

    x = jax.random.normal(k_x, (N, C_IN, H, W), dtype=jnp.float32)
    fan_in = C_IN * K * K
    weight = jax.random.normal(k_w, (C_OUT, C_IN, K, K), dtype=jnp.float32) * (2.0 / fan_in) ** 0.5
    alpha = jnp.full((C_OUT,), 0.25, dtype=jnp.float32)   # PyTorch PReLU default init

    out = jax.block_until_ready(conv_block_noac(x, weight, alpha))

    # Reference with the same bf16 rounding of the matmul operands the kernel
    # applies (accumulation stays f32), so the comparison can stay tight.
    x_bf = x.astype(jnp.bfloat16).astype(jnp.float32)
    w_bf = weight.astype(jnp.bfloat16).astype(jnp.float32)
    ref = jax.block_until_ready(_reference(x_bf, w_bf, alpha))

    assert out.shape == (N, C_OUT, H - K + 1, W - K + 1), out.shape
    max_err = float(jnp.abs(out - ref).max())
    assert jnp.allclose(out, ref, atol=1e-3, rtol=1e-3), max_err
    print("KERNEL_OK")
</pallas_src>

<mosaic_0001>
module attributes {stable_mosaic.version = 11 : i64} {
  func.func @kernel(%arg0: i32, %arg1: memref<2x4x384xf32, #tpu.memory_space<vmem>>, %arg2: memref<8x36xbf16, #tpu.memory_space<vmem>>, %arg3: memref<8x1xf32, #tpu.memory_space<vmem>>, %arg4: memref<2x8x256xf32, #tpu.memory_space<vmem>>, %arg5: memref<36x256xf32, #tpu.memory_space<vmem>>) attributes {dimension_semantics = [#tpu.dimension_semantics<arbitrary>], iteration_bounds = array<i64: 1>, scalar_prefetch = 0 : i64, scratch_operands = 1 : i64, tpu.core_type = #tpu.core_type<tc>, window_params = [{pipeline_mode = #tpu.pipeline_mode<synchronous>, transform_indices = @transform_0, window_bounds = array<i64: 2, 4, 384>}, {pipeline_mode = #tpu.pipeline_mode<synchronous>, transform_indices = @transform_1, window_bounds = array<i64: 8, 36>}, {pipeline_mode = #tpu.pipeline_mode<synchronous>, transform_indices = @transform_2, window_bounds = array<i64: 8, 1>}, {pipeline_mode = #tpu.pipeline_mode<synchronous>, transform_indices = @transform_3, window_bounds = array<i64: 2, 8, 256>}]} {
    %c0 = arith.constant 0 : index
    %c0_0 = arith.constant 0 : index
    %0 = vector.load %arg2[%c0, %c0_0] : memref<8x36xbf16, #tpu.memory_space<vmem>>, vector<8x36xbf16>
    %c0_1 = arith.constant 0 : index
    %c0_2 = arith.constant 0 : index
    %1 = vector.load %arg3[%c0_1, %c0_2] : memref<8x1xf32, #tpu.memory_space<vmem>>, vector<8x1xf32>
    %c0_3 = arith.constant 0 : index
    %c0_4 = arith.constant 0 : index
    %c0_5 = arith.constant 0 : index
    %2 = vector.load %arg1[%c0_3, %c0_4, %c0_5] : memref<2x4x384xf32, #tpu.memory_space<vmem>>, vector<1x4x384xf32>
    %3 = vector.shape_cast %2 : vector<1x4x384xf32> to vector<4x384xf32>
    %4 = vector.extract_strided_slice %3 {offsets = [0, 0], sizes = [4, 256], strides = [1, 1]} : vector<4x384xf32> to vector<4x256xf32>
    %c0_6 = arith.constant 0 : index
    %c0_7 = arith.constant 0 : index
    %5 = vector.load %arg5[%c0_6, %c0_7] : memref<36x256xf32, #tpu.memory_space<vmem>>, vector<4x256xf32>
    tpu.vector_store %arg5[%c0_6, %c0_7], %4 {strides = array<i32>} : memref<36x256xf32, #tpu.memory_space<vmem>>, vector<4x256xf32>,
    %6 = vector.extract_strided_slice %3 {offsets = [0, 1], sizes = [4, 256], strides = [1, 1]} : vector<4x384xf32> to vector<4x256xf32>
    %c4 = arith.constant 4 : index
    %c0_8 = arith.constant 0 : index
    %7 = vector.load %arg5[%c4, %c0_8] : memref<36x256xf32, #tpu.memory_space<vmem>>, vector<4x256xf32>
    tpu.vector_store %arg5[%c4, %c0_8], %6 {strides = array<i32>} : memref<36x256xf32, #tpu.memory_space<vmem>>, vector<4x256xf32>,
    %8 = vector.extract_strided_slice %3 {offsets = [0, 2], sizes = [4, 256], strides = [1, 1]} : vector<4x384xf32> to vector<4x256xf32>
    %c8 = arith.constant 8 : index
    %c0_9 = arith.constant 0 : index
    %9 = vector.load %arg5[%c8, %c0_9] : memref<36x256xf32, #tpu.memory_space<vmem>>, vector<4x256xf32>
    tpu.vector_store %arg5[%c8, %c0_9], %8 {strides = array<i32>} : memref<36x256xf32, #tpu.memory_space<vmem>>, vector<4x256xf32>,
    %10 = vector.extract_strided_slice %3 {offsets = [0, 16], sizes = [4, 256], strides = [1, 1]} : vector<4x384xf32> to vector<4x256xf32>
    %c12 = arith.constant 12 : index
    %c0_10 = arith.constant 0 : index
    %11 = vector.load %arg5[%c12, %c0_10] : memref<36x256xf32, #tpu.memory_space<vmem>>, vector<4x256xf32>
    tpu.vector_store %arg5[%c12, %c0_10], %10 {strides = array<i32>} : memref<36x256xf32, #tpu.memory_space<vmem>>, vector<4x256xf32>,
    %12 = vector.extract_strided_slice %3 {offsets = [0, 17], sizes = [4, 256], strides = [1, 1]} : vector<4x384xf32> to vector<4x256xf32>
    %c16 = arith.constant 16 : index
    %c0_11 = arith.constant 0 : index
    %13 = vector.load %arg5[%c16, %c0_11] : memref<36x256xf32, #tpu.memory_space<vmem>>, vector<4x256xf32>
    tpu.vector_store %arg5[%c16, %c0_11], %12 {strides = array<i32>} : memref<36x256xf32, #tpu.memory_space<vmem>>, vector<4x256xf32>,
    %14 = vector.extract_strided_slice %3 {offsets = [0, 18], sizes = [4, 256], strides = [1, 1]} : vector<4x384xf32> to vector<4x256xf32>
    %c20 = arith.constant 20 : index
    %c0_12 = arith.constant 0 : index
    %15 = vector.load %arg5[%c20, %c0_12] : memref<36x256xf32, #tpu.memory_space<vmem>>, vector<4x256xf32>
    tpu.vector_store %arg5[%c20, %c0_12], %14 {strides = array<i32>} : memref<36x256xf32, #tpu.memory_space<vmem>>, vector<4x256xf32>,
    %16 = vector.extract_strided_slice %3 {offsets = [0, 32], sizes = [4, 256], strides = [1, 1]} : vector<4x384xf32> to vector<4x256xf32>
    %c24 = arith.constant 24 : index
    %c0_13 = arith.constant 0 : index
    %17 = vector.load %arg5[%c24, %c0_13] : memref<36x256xf32, #tpu.memory_space<vmem>>, vector<4x256xf32>
    tpu.vector_store %arg5[%c24, %c0_13], %16 {strides = array<i32>} : memref<36x256xf32, #tpu.memory_space<vmem>>, vector<4x256xf32>,
    %18 = vector.extract_strided_slice %3 {offsets = [0, 33], sizes = [4, 256], strides = [1, 1]} : vector<4x384xf32> to vector<4x256xf32>
    %c28 = arith.constant 28 : index
    %c0_14 = arith.constant 0 : index
    %19 = vector.load %arg5[%c28, %c0_14] : memref<36x256xf32, #tpu.memory_space<vmem>>, vector<4x256xf32>
    tpu.vector_store %arg5[%c28, %c0_14], %18 {strides = array<i32>} : memref<36x256xf32, #tpu.memory_space<vmem>>, vector<4x256xf32>,
    %20 = vector.extract_strided_slice %3 {offsets = [0, 34], sizes = [4, 256], strides = [1, 1]} : vector<4x384xf32> to vector<4x256xf32>
    %c32 = arith.constant 32 : index
    %c0_15 = arith.constant 0 : index
    %21 = vector.load %arg5[%c32, %c0_15] : memref<36x256xf32, #tpu.memory_space<vmem>>, vector<4x256xf32>
    tpu.vector_store %arg5[%c32, %c0_15], %20 {strides = array<i32>} : memref<36x256xf32, #tpu.memory_space<vmem>>, vector<4x256xf32>,
    %c0_16 = arith.constant 0 : index
    %c0_17 = arith.constant 0 : index
    %22 = vector.load %arg5[%c0_16, %c0_17] : memref<36x256xf32, #tpu.memory_space<vmem>>, vector<36x256xf32>
    %23 = arith.truncf %22 : vector<36x256xf32> to vector<36x256xbf16>
    %cst = arith.constant dense<0.000000e+00> : vector<8x256xf32>
    %24 = tpu.matmul %0, %23, %cst {dimension_numbers = #tpu.dot_dimension_numbers<[1], [0], [0], [1], [0, 0, 1, 1], [], []>} : vector<8x36xbf16>, vector<36x256xbf16>, vector<8x256xf32> -> vector<8x256xf32>
    %cst_18 = arith.constant 0.000000e+00 : f32
    %25 = vector.broadcast %cst_18 : f32 to vector<8x256xf32>
    %26 = arith.cmpf oge, %24, %25 : vector<8x256xf32>
    %27 = vector.broadcast %1 : vector<8x1xf32> to vector<8x256xf32>
    %28 = arith.mulf %24, %27 : vector<8x256xf32>
    %29 = arith.select %26, %24, %28 : vector<8x256xi1>, vector<8x256xf32>
    %c0_19 = arith.constant 0 : index
    %c0_20 = arith.constant 0 : index
    %c0_21 = arith.constant 0 : index
    %30 = vector.load %arg4[%c0_19, %c0_20, %c0_21] : memref<2x8x256xf32, #tpu.memory_space<vmem>>, vector<1x8x256xf32>
    %31 = vector.shape_cast %30 : vector<1x8x256xf32> to vector<8x256xf32>
    %32 = vector.shape_cast %29 : vector<8x256xf32> to vector<1x8x256xf32>
    tpu.vector_store %arg4[%c0_19, %c0_20, %c0_21], %32 {strides = array<i32>} : memref<2x8x256xf32, #tpu.memory_space<vmem>>, vector<1x8x256xf32>,
    %c1 = arith.constant 1 : index
    %c0_22 = arith.constant 0 : index
    %c0_23 = arith.constant 0 : index
    %33 = vector.load %arg1[%c1, %c0_22, %c0_23] : memref<2x4x384xf32, #tpu.memory_space<vmem>>, vector<1x4x384xf32>
    %34 = vector.shape_cast %33 : vector<1x4x384xf32> to vector<4x384xf32>
    %35 = vector.extract_strided_slice %34 {offsets = [0, 0], sizes = [4, 256], strides = [1, 1]} : vector<4x384xf32> to vector<4x256xf32>
    %c0_24 = arith.constant 0 : index
    %c0_25 = arith.constant 0 : index
    %36 = vector.load %arg5[%c0_24, %c0_25] : memref<36x256xf32, #tpu.memory_space<vmem>>, vector<4x256xf32>
    tpu.vector_store %arg5[%c0_24, %c0_25], %35 {strides = array<i32>} : memref<36x256xf32, #tpu.memory_space<vmem>>, vector<4x256xf32>,
    %37 = vector.extract_strided_slice %34 {offsets = [0, 1], sizes = [4, 256], strides = [1, 1]} : vector<4x384xf32> to vector<4x256xf32>
    %c4_26 = arith.constant 4 : index
    %c0_27 = arith.constant 0 : index
    %38 = vector.load %arg5[%c4_26, %c0_27] : memref<36x256xf32, #tpu.memory_space<vmem>>, vector<4x256xf32>
    tpu.vector_store %arg5[%c4_26, %c0_27], %37 {strides = array<i32>} : memref<36x256xf32, #tpu.memory_space<vmem>>, vector<4x256xf32>,
    %39 = vector.extract_strided_slice %34 {offsets = [0, 2], sizes = [4, 256], strides = [1, 1]} : vector<4x384xf32> to vector<4x256xf32>
    %c8_28 = arith.constant 8 : index
    %c0_29 = arith.constant 0 : index
    %40 = vector.load %arg5[%c8_28, %c0_29] : memref<36x256xf32, #tpu.memory_space<vmem>>, vector<4x256xf32>
    tpu.vector_store %arg5[%c8_28, %c0_29], %39 {strides = array<i32>} : memref<36x256xf32, #tpu.memory_space<vmem>>, vector<4x256xf32>,
    %41 = vector.extract_strided_slice %34 {offsets = [0, 16], sizes = [4, 256], strides = [1, 1]} : vector<4x384xf32> to vector<4x256xf32>
    %c12_30 = arith.constant 12 : index
    %c0_31 = arith.constant 0 : index
    %42 = vector.load %arg5[%c12_30, %c0_31] : memref<36x256xf32, #tpu.memory_space<vmem>>, vector<4x256xf32>
    tpu.vector_store %arg5[%c12_30, %c0_31], %41 {strides = array<i32>} : memref<36x256xf32, #tpu.memory_space<vmem>>, vector<4x256xf32>,
    %43 = vector.extract_strided_slice %34 {offsets = [0, 17], sizes = [4, 256], strides = [1, 1]} : vector<4x384xf32> to vector<4x256xf32>
    %c16_32 = arith.constant 16 : index
    %c0_33 = arith.constant 0 : index
    %44 = vector.load %arg5[%c16_32, %c0_33] : memref<36x256xf32, #tpu.memory_space<vmem>>, vector<4x256xf32>
    tpu.vector_store %arg5[%c16_32, %c0_33], %43 {strides = array<i32>} : memref<36x256xf32, #tpu.memory_space<vmem>>, vector<4x256xf32>,
    %45 = vector.extract_strided_slice %34 {offsets = [0, 18], sizes = [4, 256], strides = [1, 1]} : vector<4x384xf32> to vector<4x256xf32>
    %c20_34 = arith.constant 20 : index
    %c0_35 = arith.constant 0 : index
    %46 = vector.load %arg5[%c20_34, %c0_35] : memref<36x256xf32, #tpu.memory_space<vmem>>, vector<4x256xf32>
    tpu.vector_store %arg5[%c20_34, %c0_35], %45 {strides = array<i32>} : memref<36x256xf32, #tpu.memory_space<vmem>>, vector<4x256xf32>,
    %47 = vector.extract_strided_slice %34 {offsets = [0, 32], sizes = [4, 256], strides = [1, 1]} : vector<4x384xf32> to vector<4x256xf32>
    %c24_36 = arith.constant 24 : index
    %c0_37 = arith.constant 0 : index
    %48 = vector.load %arg5[%c24_36, %c0_37] : memref<36x256xf32, #tpu.memory_space<vmem>>, vector<4x256xf32>
    tpu.vector_store %arg5[%c24_36, %c0_37], %47 {strides = array<i32>} : memref<36x256xf32, #tpu.memory_space<vmem>>, vector<4x256xf32>,
    %49 = vector.extract_strided_slice %34 {offsets = [0, 33], sizes = [4, 256], strides = [1, 1]} : vector<4x384xf32> to vector<4x256xf32>
    %c28_38 = arith.constant 28 : index
    %c0_39 = arith.constant 0 : index
    %50 = vector.load %arg5[%c28_38, %c0_39] : memref<36x256xf32, #tpu.memory_space<vmem>>, vector<4x256xf32>
    tpu.vector_store %arg5[%c28_38, %c0_39], %49 {strides = array<i32>} : memref<36x256xf32, #tpu.memory_space<vmem>>, vector<4x256xf32>,
    %51 = vector.extract_strided_slice %34 {offsets = [0, 34], sizes = [4, 256], strides = [1, 1]} : vector<4x384xf32> to vector<4x256xf32>
    %c32_40 = arith.constant 32 : index
    %c0_41 = arith.constant 0 : index
    %52 = vector.load %arg5[%c32_40, %c0_41] : memref<36x256xf32, #tpu.memory_space<vmem>>, vector<4x256xf32>
    tpu.vector_store %arg5[%c32_40, %c0_41], %51 {strides = array<i32>} : memref<36x256xf32, #tpu.memory_space<vmem>>, vector<4x256xf32>,
    %c0_42 = arith.constant 0 : index
    %c0_43 = arith.constant 0 : index
    %53 = vector.load %arg5[%c0_42, %c0_43] : memref<36x256xf32, #tpu.memory_space<vmem>>, vector<36x256xf32>
    %54 = arith.truncf %53 : vector<36x256xf32> to vector<36x256xbf16>
    %cst_44 = arith.constant dense<0.000000e+00> : vector<8x256xf32>
    %55 = tpu.matmul %0, %54, %cst_44 {dimension_numbers = #tpu.dot_dimension_numbers<[1], [0], [0], [1], [0, 0, 1, 1], [], []>} : vector<8x36xbf16>, vector<36x256xbf16>, vector<8x256xf32> -> vector<8x256xf32>
    %cst_45 = arith.constant 0.000000e+00 : f32
    %56 = vector.broadcast %cst_45 : f32 to vector<8x256xf32>
    %57 = arith.cmpf oge, %55, %56 : vector<8x256xf32>
    %58 = vector.broadcast %1 : vector<8x1xf32> to vector<8x256xf32>
    %59 = arith.mulf %55, %58 : vector<8x256xf32>
    %60 = arith.select %57, %55, %59 : vector<8x256xi1>, vector<8x256xf32>
    %c1_46 = arith.constant 1 : index
    %c0_47 = arith.constant 0 : index
    %c0_48 = arith.constant 0 : index
    %61 = vector.load %arg4[%c1_46, %c0_47, %c0_48] : memref<2x8x256xf32, #tpu.memory_space<vmem>>, vector<1x8x256xf32>
    %62 = vector.shape_cast %61 : vector<1x8x256xf32> to vector<8x256xf32>
    %63 = vector.shape_cast %60 : vector<8x256xf32> to vector<1x8x256xf32>
    tpu.vector_store %arg4[%c1_46, %c0_47, %c0_48], %63 {strides = array<i32>} : memref<2x8x256xf32, #tpu.memory_space<vmem>>, vector<1x8x256xf32>,
    return
  }
  func.func @transform_0(%arg0: i32) -> (i32, i32, i32) {
    %c0_i32 = arith.constant 0 : i32
    %c0_i32_0 = arith.constant 0 : i32
    %c0_i32_1 = arith.constant 0 : i32
    %c0_i32_2 = arith.constant 0 : i32
    return %c0_i32, %c0_i32_0, %c0_i32_1 : i32, i32, i32
  }
  func.func @transform_1(%arg0: i32) -> (i32, i32) {
    %c0_i32 = arith.constant 0 : i32
    %c0_i32_0 = arith.constant 0 : i32
    %c0_i32_1 = arith.constant 0 : i32
    return %c0_i32, %c0_i32_0 : i32, i32
  }
  func.func @transform_2(%arg0: i32) -> (i32, i32) {
    %c0_i32 = arith.constant 0 : i32
    %c0_i32_0 = arith.constant 0 : i32
    %c0_i32_1 = arith.constant 0 : i32
    return %c0_i32, %c0_i32_0 : i32, i32
  }
  func.func @transform_3(%arg0: i32) -> (i32, i32, i32) {
    %c0_i32 = arith.constant 0 : i32
    %c0_i32_0 = arith.constant 0 : i32
    %c0_i32_1 = arith.constant 0 : i32
    %c0_i32_2 = arith.constant 0 : i32
    return %c0_i32, %c0_i32_0, %c0_i32_1 : i32, i32, i32
  }
}

</mosaic_0001>

<bundles_post_ra>
// kernel: conv_block_noac.1
= control target key start
LH: loop header
LB: loop body
LE: loop exit
PB: predicated region body
PF: predicated region fallthrough
CT: control target
= control target key end

     0   :  { %s419_s16 = smov 126   ;;  %s420_s17 = smov 127   ;;  %v427_v10 = vmov 0   ;;  %vm33_vm0 = vcmask 1039360   ;;  %vm46_vm1 = vcmask 1031168   ;;  %vm59_vm2 = vcmask 916480   ;;  %s583_s0 = inlined_call_operand.vmem [shape: f32[2,4,384], index: 0, kind: input, shape index: {}]   ;;  %s584_s2 = inlined_call_operand.vmem [shape: f32[8,1], index: 2, kind: input, shape index: {}]   ;;  %s585_s1 = inlined_call_operand.vmem [shape: bf16[8,36], index: 1, kind: input, shape index: {}]   ;;  %s586_s3 = inlined_call_operand.vmem [shape: f32[2,8,256], index: 3, kind: output, shape index: {}]  }
   0x1   :  { %v18_v0 = vld [vmem:[%s583_s0 + $0x8] sm:$0xf]  ;;  %v17_v1 = vld [vmem:[%s583_s0] sm:$0xff]  ;;  %s421_s18 = smov 112   ;;  %s422_s19 = smov 111   ;;  %v484_v7 = vld [vmem:[%s583_s0 + $0xc] sm:$0xff]  ;;  %190 = vmatprep.mubr.bf16.mxu0 %v427_v10  ;;  %373 = vmatprep.mubr.bf16.mxu1 %v427_v10 }
   0x2   :  { %44 = vrot.lane.b32.xlu1 %v18_v0, %s419_s16  ;;  %22 = vst [vmem:[#allocation2] sm:$0xf] %v17_v1  ;;  %29 = vrot.lane.b32.xlu0 %v17_v1, %s420_s17  ;;  %v26_v2 = vcombine.low %v18_v0, %v18_v0  ;;  %v20_v3 = vcombine.high %v17_v1, %v17_v1  ;;  %s423_s20 = smov 110   ;;  %s424_s21 = smov 96   ;;  %v398_v5 = vld [vmem:[%s583_s0 + $0x14] sm:$0xf] }
   0x3   :  { %v25_v4 = vcombine.low %v17_v1, %v17_v1  ;;  %s425_s22 = smov 95   ;;  %s426_s23 = smov 94   ;;  %v222_v6 = vcombine.low %v398_v5, %v398_v5  ;;  %v216_v8 = vcombine.high %v484_v7, %v484_v7  ;;  %v221_v9 = vcombine.low %v484_v7, %v484_v7  ;;  %412 = vset.pattern.permute.xlu0 %v427_v10  ;;  %v16_v11 = vld [vmem:[%s584_s2] sm:$0xff] }
   0x4   :  { %23 = vst [vmem:[#allocation2 + $0x8] sm:$0xf] %v20_v3  ;;  %vm72_vm3 = vcmask 908288   ;;  %vm85_vm4 = vcmask 900096   ;;  %vm98_vm5 = vcmask 785408   ;;  %vm111_vm6 = vcmask 777216  }
   0x5   :  { %vm124_vm7 = vcmask 769024   ;;  %vm151_vm8 = vcmask 1041408   ;;  %vm147_vm9 = vcmask 293888  }
   0x6   :  { %31 = vrot.lane.b32.xlu0 %v26_v2, %s420_s17  ;;  %42 = vrot.lane.b32.xlu1 %v20_v3, %s419_s16 }
   0xa   :  { %55 = vrot.lane.b32.xlu0 %v17_v1, %s421_s18  ;;  %57 = vrot.lane.b32.xlu1 %v26_v2, %s421_s18 }
   0xe   :  { %27 = vrot.lane.b32.xlu0 %v25_v4, %s420_s17  ;;  %40 = vrot.lane.b32.xlu1 %v17_v1, %s419_s16 }
  0x12   :  { %53 = vrot.lane.b32.xlu0 %v25_v4, %s421_s18  ;;  %68 = vrot.lane.b32.xlu1 %v20_v3, %s422_s19 }
  0x16   :  { %70 = vrot.lane.b32.xlu0 %v18_v0, %s422_s19  ;;  %81 = vrot.lane.b32.xlu1 %v17_v1, %s423_s20 }
  0x1a   :  { %83 = vrot.lane.b32.xlu0 %v26_v2, %s423_s20  ;;  %94 = vrot.lane.b32.xlu1 %v20_v3, %s424_s21 }
  0x1e   :  { %96 = vrot.lane.b32.xlu0 %v18_v0, %s424_s21  ;;  %107 = vrot.lane.b32.xlu1 %v17_v1, %s425_s22 }
  0x22   :  { %109 = vrot.lane.b32.xlu0 %v26_v2, %s425_s22  ;;  %66 = vrot.lane.b32.xlu1 %v17_v1, %s422_s19 }
  0x26   :  { %79 = vrot.lane.b32.xlu0 %v25_v4, %s423_s20  ;;  %92 = vrot.lane.b32.xlu1 %v17_v1, %s424_s21 }
  0x2a   :  { %105 = vrot.lane.b32.xlu0 %v25_v4, %s425_s22  ;;  %118 = vrot.lane.b32.xlu1 %v17_v1, %s426_s23 }
  0x2e   :  { %120 = vrot.lane.b32.xlu0 %v20_v3, %s426_s23  ;;  %122 = vrot.lane.b32.xlu1 %v18_v0, %s426_s23 }
  0x32   :  { %225 = vrot.lane.b32.xlu0 %v484_v7, %s420_s17  ;;  %227 = vrot.lane.b32.xlu1 %v222_v6, %s420_s17 }
  0x36   :  { %237 = vrot.lane.b32.xlu0 %v216_v8, %s419_s16  ;;  %239 = vrot.lane.b32.xlu1 %v398_v5, %s419_s16 }
  0x3a   :  { %249 = vrot.lane.b32.xlu0 %v484_v7, %s421_s18  ;;  %251 = vrot.lane.b32.xlu1 %v222_v6, %s421_s18 }
  0x3e   :  { %223 = vrot.lane.b32.xlu0 %v221_v9, %s420_s17  ;;  %235 = vrot.lane.b32.xlu1 %v484_v7, %s419_s16 }
  0x42   :  { %247 = vrot.lane.b32.xlu0 %v221_v9, %s421_s18  ;;  %261 = vrot.lane.b32.xlu1 %v216_v8, %s422_s19 }
  0x46   :  { %263 = vrot.lane.b32.xlu0 %v398_v5, %s422_s19  ;;  %273 = vrot.lane.b32.xlu1 %v484_v7, %s423_s20 }
  0x4a   :  { %275 = vrot.lane.b32.xlu0 %v222_v6, %s423_s20  ;;  %285 = vrot.lane.b32.xlu1 %v216_v8, %s424_s21 }
  0x4e   :  { %287 = vrot.lane.b32.xlu0 %v398_v5, %s424_s21  ;;  %297 = vrot.lane.b32.xlu1 %v484_v7, %s425_s22 }
  0x52   :  { %299 = vrot.lane.b32.xlu0 %v222_v6, %s425_s22  ;;  %259 = vrot.lane.b32.xlu1 %v484_v7, %s422_s19 }
  0x56   :  { %271 = vrot.lane.b32.xlu0 %v221_v9, %s423_s20  ;;  %283 = vrot.lane.b32.xlu1 %v484_v7, %s424_s21 }
  0x5a   :  { %295 = vrot.lane.b32.xlu0 %v221_v9, %s425_s22  ;;  %307 = vrot.lane.b32.xlu1 %v484_v7, %s426_s23 }
  0x5e   :  { %309 = vrot.lane.b32.xlu0 %v216_v8, %s426_s23  ;;  %311 = vrot.lane.b32.xlu1 %v398_v5, %s426_s23 }
  0x62   :  { %203 = vperm.xlu0 %412, %v16_v11  }
  0x74   :  { %v45_v12 = vpop.permute.xlu1 %44  ;;  %v30_v13 = vpop.permute.xlu0 %29 }
  0x78   :  { %v32_v14 = vpop.permute.xlu0 %31  ;;  %v43_v15 = vpop.permute.xlu1 %42 }
  0x79   :  { %v35_v16 = vsel %vm33_vm0, %v30_v13, %v32_v14  ;;  %v48_v17 = vsel %vm46_vm1, %v43_v15, %v45_v12  ;;  %v550_v14 = vld [vmem:[%s585_s1] sm:$0xf] }
  0x7a   :  { %39 = vst [vmem:[#allocation2 + $0x8] sm:$0xf0] %v35_v16  ;;  %52 = vst [vmem:[#allocation2 + $0x18] sm:$0xf] %v48_v17 }
  0x7c   :  { %v56_v18 = vpop.permute.xlu0 %55  ;;  %v58_v19 = vpop.permute.xlu1 %57 }
  0x7d   :  { %v61_v20 = vsel %vm59_vm2, %v56_v18, %v58_v19 }
  0x7e   :  { %65 = vst [vmem:[#allocation2 + $0x18] sm:$0xf0] %v61_v20 }
  0x80   :  { %v28_v21 = vpop.permute.xlu0 %27  ;;  %v41_v22 = vpop.permute.xlu1 %40 }
  0x81   :  { %v34_v23 = vsel %vm33_vm0, %v28_v21, %v30_v13  ;;  %v47_v24 = vsel %vm46_vm1, %v41_v22, %v43_v15  ;;  %v132_v25 = vld [vmem:[#allocation2 + $0x8] sm:$0xff] }
  0x82   :  { %38 = vst [vmem:[#allocation2] sm:$0xf0] %v34_v23  ;;  %51 = vst [vmem:[#allocation2 + $0x10] sm:$0xf] %v47_v24 }
  0x83   :  { %219 = vst [vmem:[#allocation2 + $0x8] sm:$0xf] %v216_v8 }
  0x84   :  { %v54_v26 = vpop.permute.xlu0 %53  ;;  %v69_v27 = vpop.permute.xlu1 %68 }
  0x85   :  { %v60_v28 = vsel %vm59_vm2, %v54_v26, %v56_v18  ;;  %v134_v29 = vld [vmem:[#allocation2 + $0x18] sm:$0xff] }
  0x86   :  { %64 = vst [vmem:[#allocation2 + $0x10] sm:$0xf0] %v60_v28  ;;  %v142_v30 = vpack.c.bf16 %v134_v29, %v132_v25 }
  0x88   :  { %v71_v31 = vpop.permute.xlu0 %70  ;;  %v82_v32 = vpop.permute.xlu1 %81  ;;  %158 = vmatprep.subr.bf16.mxu0 %v142_v30 }
  0x89   :  { %v74_v33 = vsel %vm72_vm3, %v69_v27, %v71_v31  ;;  %v131_v34 = vld [vmem:[#allocation2] sm:$0xff] }
  0x8a   :  { %78 = vst [vmem:[#allocation2 + $0x28] sm:$0xf] %v74_v33  ;;  %218 = vst [vmem:[#allocation2] sm:$0xf] %v484_v7 }
  0x8c   :  { %v84_v35 = vpop.permute.xlu0 %83  ;;  %v95_v36 = vpop.permute.xlu1 %94 }
  0x8d   :  { %v87_v37 = vsel %vm85_vm4, %v82_v32, %v84_v35  ;;  %v133_v38 = vld [vmem:[#allocation2 + $0x10] sm:$0xff] }
  0x8e   :  { %91 = vst [vmem:[#allocation2 + $0x28] sm:$0xf0] %v87_v37  ;;  %v141_v39 = vpack.c.bf16 %v133_v38, %v131_v34 }
  0x90   :  { %v97_v40 = vpop.permute.xlu0 %96  ;;  %v108_v41 = vpop.permute.xlu1 %107  ;;  %159 = vmatpush1.bf16.msra.mxu0 %v141_v39 }
  0x91   :  { %v100_v42 = vsel %vm98_vm5, %v95_v36, %v97_v40 }
  0x92   :  { %104 = vst [vmem:[#allocation2 + $0x38] sm:$0xf] %v100_v42 }
  0x94   :  { %v110_v43 = vpop.permute.xlu0 %109  ;;  %v67_v44 = vpop.permute.xlu1 %66 }
  0x95   :  { %v113_v45 = vsel %vm111_vm6, %v108_v41, %v110_v43  ;;  %v73_v46 = vsel %vm72_vm3, %v67_v44, %v69_v27  ;;  %v136_v54 = vld [vmem:[#allocation2 + $0x28] sm:$0xff] }
  0x96   :  { %117 = vst [vmem:[#allocation2 + $0x38] sm:$0xf0] %v113_v45  ;;  %77 = vst [vmem:[#allocation2 + $0x20] sm:$0xf] %v73_v46 }
  0x98   :  { %v80_v47 = vpop.permute.xlu0 %79  ;;  %v93_v48 = vpop.permute.xlu1 %92 }
  0x99   :  { %v86_v49 = vsel %vm85_vm4, %v80_v47, %v82_v32  ;;  %v99_v50 = vsel %vm98_vm5, %v93_v48, %v95_v36 }
  0x9a   :  { %90 = vst [vmem:[#allocation2 + $0x20] sm:$0xf0] %v86_v49  ;;  %103 = vst [vmem:[#allocation2 + $0x30] sm:$0xf] %v99_v50 }
  0x9c   :  { %v106_v51 = vpop.permute.xlu0 %105  ;;  %v119_v52 = vpop.permute.xlu1 %118 }
  0x9d   :  { %v112_v53 = vsel %vm111_vm6, %v106_v51, %v108_v41  ;;  %v138_v55 = vld [vmem:[#allocation2 + $0x38] sm:$0xff] }
  0x9e   :  { %116 = vst [vmem:[#allocation2 + $0x30] sm:$0xf0] %v112_v53  ;;  %v144_v56 = vpack.c.bf16 %v138_v55, %v136_v54 }
  0xa0   :  { %v121_v57 = vpop.permute.xlu0 %120  ;;  %v123_v58 = vpop.permute.xlu1 %122  ;;  %160 = vmatprep.subr.bf16.mxu0 %v144_v56 }
  0xa1   :  { %v125_v59 = vsel %vm124_vm7, %v119_v52, %v121_v57  ;;  %v126_v60 = vsel %vm124_vm7, %v121_v57, %v123_v58  ;;  %v135_v0 = vld [vmem:[#allocation2 + $0x20] sm:$0xff] }
  0xa2   :  { %129 = vst [vmem:[#allocation2 + $0x40] sm:$0xf] %v125_v59  ;;  %130 = vst [vmem:[#allocation2 + $0x48] sm:$0xf] %v126_v60 }
  0xa4   :  { %v226_v61 = vpop.permute.xlu0 %225  ;;  %v228_v62 = vpop.permute.xlu1 %227 }
  0xa5   :  { %v230_v63 = vsel %vm33_vm0, %v226_v61, %v228_v62  ;;  %v137_v1 = vld [vmem:[#allocation2 + $0x30] sm:$0xff] }
  0xa6   :  { %234 = vst [vmem:[#allocation2 + $0x8] sm:$0xf0] %v230_v63  ;;  %v143_v2 = vpack.c.bf16 %v137_v1, %v135_v0 }
  0xa8   :  { %v238_v3 = vpop.permute.xlu0 %237  ;;  %v240_v4 = vpop.permute.xlu1 %239  ;;  %161 = vmatpush1.bf16.msra.mxu0 %v143_v2 }
  0xa9   :  { %v242_v5 = vsel %vm46_vm1, %v238_v3, %v240_v4  ;;  %v140_v6 = vld [vmem:[#allocation2 + $0x48] sm:$0xf]  ;;  %v139_v7 = vld [vmem:[#allocation2 + $0x40] sm:$0xf] }
  0xaa   :  { %246 = vst [vmem:[#allocation2 + $0x18] sm:$0xf] %v242_v5  ;;  %v146_v8 = vpack.c.bf16 %v140_v6, %v140_v6  ;;  %v145_v9 = vpack.c.bf16 %v139_v7, %v139_v7 }
  0xac   :  { %v250_v10 = vpop.permute.xlu0 %249  ;;  %v252_v11 = vpop.permute.xlu1 %251  ;;  %395 = vmatprep.subr.msk.bf16.mxu0 %vm151_vm8, %v146_v8  ;;  %v153_v12 = vsel %vm151_vm8, %v145_v9, 0 }
  0xad   :  { %v254_v13 = vsel %vm59_vm2, %v250_v10, %v252_v11  ;;  %163 = vmatpush1.bf16.msra.mxu0 %v153_v12  ;;  %v320_v22 = vld [vmem:[#allocation2 + $0x8] sm:$0xff] }
  0xae   :  { %258 = vst [vmem:[#allocation2 + $0x18] sm:$0xf0] %v254_v13 }
  0xb0   :  { %v224_v15 = vpop.permute.xlu0 %223  ;;  %v236_v16 = vpop.permute.xlu1 %235  ;;  %396 = vmatmul.mubr.msk.bf16.vlgmr.msra.gmra.mrb[0].mxu0 %vm147_vm9, %v550_v14 }
  0xb1   :  { %v229_v17 = vsel %vm33_vm0, %v224_v15, %v226_v61  ;;  %v241_v18 = vsel %vm46_vm1, %v236_v16, %v238_v3 }
  0xb2   :  { %233 = vst [vmem:[#allocation2] sm:$0xf0] %v229_v17  ;;  %245 = vst [vmem:[#allocation2 + $0x10] sm:$0xf] %v241_v18 }
  0xb4   :  { %v248_v19 = vpop.permute.xlu0 %247  ;;  %v262_v20 = vpop.permute.xlu1 %261 }
  0xb5   :  { %v253_v21 = vsel %vm59_vm2, %v248_v19, %v250_v10  ;;  %v322_v23 = vld [vmem:[#allocation2 + $0x18] sm:$0xff] }
  0xb6   :  { %257 = vst [vmem:[#allocation2 + $0x10] sm:$0xf0] %v253_v21  ;;  %v330_v24 = vpack.c.bf16 %v322_v23, %v320_v22 }
  0xb8   :  { %v264_v25 = vpop.permute.xlu0 %263  ;;  %v274_v26 = vpop.permute.xlu1 %273  ;;  %341 = vmatprep.subr.bf16.mxu1 %v330_v24 }
  0xb9   :  { %v266_v27 = vsel %vm72_vm3, %v262_v20, %v264_v25  ;;  %v319_v31 = vld [vmem:[#allocation2] sm:$0xff] }
  0xba   :  { %270 = vst [vmem:[#allocation2 + $0x28] sm:$0xf] %v266_v27 }
  0xbc   :  { %v276_v28 = vpop.permute.xlu0 %275  ;;  %v286_v29 = vpop.permute.xlu1 %285 }
  0xbd   :  { %v278_v30 = vsel %vm85_vm4, %v274_v26, %v276_v28  ;;  %v321_v32 = vld [vmem:[#allocation2 + $0x10] sm:$0xff] }
  0xbe   :  { %282 = vst [vmem:[#allocation2 + $0x28] sm:$0xf0] %v278_v30  ;;  %v329_v33 = vpack.c.bf16 %v321_v32, %v319_v31 }
  0xc0   :  { %v288_v34 = vpop.permute.xlu0 %287  ;;  %v298_v35 = vpop.permute.xlu1 %297  ;;  %342 = vmatpush1.bf16.msra.mxu1 %v329_v33 }
  0xc1   :  { %v290_v36 = vsel %vm98_vm5, %v286_v29, %v288_v34 }
  0xc2   :  { %294 = vst [vmem:[#allocation2 + $0x38] sm:$0xf] %v290_v36 }
  0xc4   :  { %v300_v37 = vpop.permute.xlu0 %299  ;;  %v260_v38 = vpop.permute.xlu1 %259 }
  0xc5   :  { %v302_v39 = vsel %vm111_vm6, %v298_v35, %v300_v37  ;;  %v265_v40 = vsel %vm72_vm3, %v260_v38, %v262_v20  ;;  %v324_v48 = vld [vmem:[#allocation2 + $0x28] sm:$0xff] }
  0xc6   :  { %306 = vst [vmem:[#allocation2 + $0x38] sm:$0xf0] %v302_v39  ;;  %269 = vst [vmem:[#allocation2 + $0x20] sm:$0xf] %v265_v40 }
  0xc8   :  { %v272_v41 = vpop.permute.xlu0 %271  ;;  %v284_v42 = vpop.permute.xlu1 %283 }
  0xc9   :  { %v277_v43 = vsel %vm85_vm4, %v272_v41, %v274_v26  ;;  %v289_v44 = vsel %vm98_vm5, %v284_v42, %v286_v29 }
  0xca   :  { %281 = vst [vmem:[#allocation2 + $0x20] sm:$0xf0] %v277_v43  ;;  %293 = vst [vmem:[#allocation2 + $0x30] sm:$0xf] %v289_v44 }
  0xcc   :  { %v296_v45 = vpop.permute.xlu0 %295  ;;  %v308_v46 = vpop.permute.xlu1 %307 }
  0xcd   :  { %v301_v47 = vsel %vm111_vm6, %v296_v45, %v298_v35  ;;  %v326_v49 = vld [vmem:[#allocation2 + $0x38] sm:$0xff] }
  0xce   :  { %305 = vst [vmem:[#allocation2 + $0x30] sm:$0xf0] %v301_v47  ;;  %v332_v50 = vpack.c.bf16 %v326_v49, %v324_v48 }
  0xd0   :  { %v310_v51 = vpop.permute.xlu0 %309  ;;  %v312_v52 = vpop.permute.xlu1 %311  ;;  %343 = vmatprep.subr.bf16.mxu1 %v332_v50 }
  0xd1   :  { %v313_v53 = vsel %vm124_vm7, %v308_v46, %v310_v51  ;;  %v314_v54 = vsel %vm124_vm7, %v310_v51, %v312_v52  ;;  %v323_v55 = vld [vmem:[#allocation2 + $0x20] sm:$0xff] }
  0xd2   :  { %317 = vst [vmem:[#allocation2 + $0x40] sm:$0xf] %v313_v53  ;;  %318 = vst [vmem:[#allocation2 + $0x48] sm:$0xf] %v314_v54 }
  0xd5   :  { %v325_v56 = vld [vmem:[#allocation2 + $0x30] sm:$0xff] }
  0xd6   :  { %v331_v57 = vpack.c.bf16 %v325_v56, %v323_v55 }
  0xd8   :  { %344 = vmatpush1.bf16.msra.mxu1 %v331_v57 }
  0xd9   :  { %v328_v58 = vld [vmem:[#allocation2 + $0x48] sm:$0xf]  ;;  %v327_v59 = vld [vmem:[#allocation2 + $0x40] sm:$0xf] }
  0xda   :  { %v334_v60 = vpack.c.bf16 %v328_v58, %v328_v58  ;;  %v333_v61 = vpack.c.bf16 %v327_v59, %v327_v59 }
  0xdc   :  { %399 = vmatprep.subr.msk.bf16.mxu1 %vm151_vm8, %v334_v60  ;;  %v336_v62 = vsel %vm151_vm8, %v333_v61, 0 }
  0xdd   :  { %346 = vmatpush1.bf16.msra.mxu1 %v336_v62 }
  0xe0   :  { %400 = vmatmul.mubr.msk.bf16.vlgmr.msra.gmra.mrb[0].mxu1 %vm147_vm9, %v550_v14 }
  0xe1   :  { %v204_v63 = vpop.permute.xlu0 %203 }
 0x183   :  { %v192_v0 = vpop.f32.mrb[0].mxu0 }
 0x184   :  { %vm199_vm10 = vcmp.ge.f32.partialorder %v192_v0, 0.0  ;;  %v206_v1 = vmul.f32 %v204_v63, %v192_v0  ;;  %v194_v2 = vpop.f32.mrb[1].mxu0 }
 0x185   :  { %vm200_vm11 = vcmp.ge.f32.partialorder %v194_v2, 0.0  ;;  %v207_v3 = vmul.f32 %v204_v63, %v194_v2  ;;  %v196_v4 = vpop.f32.mrb[2].mxu0 }
 0x186   :  { %v208_v5 = vsel %vm199_vm10, %v192_v0, %v206_v1  ;;  %v197_v6 = vpop.f32.mrb[3].mxu0 }
 0x187   :  { %v209_v7 = vsel %vm200_vm11, %v194_v2, %v207_v3  ;;  %210 = vst [vmem:[%s586_s3] sm:$0xff] %v208_v5 }
 0x188   :  { %211 = vst [vmem:[%s586_s3 + $0x8] sm:$0xff] %v209_v7 }
 0x1b3   :  { %v375_v8 = vpop.f32.mrb[0].mxu1 }
 0x1b4   :  { %vm382_vm12 = vcmp.ge.f32.partialorder %v375_v8, 0.0  ;;  %v384_v9 = vmul.f32 %v375_v8, %v204_v63  ;;  %v377_v10 = vpop.f32.mrb[1].mxu1 }
 0x1b5   :  { %vm383_vm13 = vcmp.ge.f32.partialorder %v377_v10, 0.0  ;;  %v385_v11 = vmul.f32 %v377_v10, %v204_v63  ;;  %v379_v12 = vpop.f32.mrb[2].mxu1 }
 0x1b6   :  { %v386_v13 = vsel %vm382_vm12, %v375_v8, %v384_v9  ;;  %v380_v14 = vpop.f32.mrb[3].mxu1 }
 0x1b7   :  { %401 = vst [vmem:[%s586_s3 + $0x10] sm:$0xff] %v386_v13  ;;  %v387_v15 = vsel %vm383_vm13, %v377_v10, %v385_v11 }
 0x1b8   :  { %402 = vst [vmem:[%s586_s3 + $0x18] sm:$0xff] %v387_v15 }

</bundles_post_ra>
